<compile_context>
chip_gen: v7x
topology: tpu7x:2x2x1
jax: 0.10.0
libtpu: 0.0.40
codegen_flags: <defaults>
</compile_context>

<pallas_src>
import jax
import jax.numpy as jnp
from jax.experimental import pallas as pl
from jax.experimental.pallas import tpu as pltpu


def dqn_forward(x, w1, b1, w2, b2, *, block_b=65536, compute_dtype=jnp.bfloat16):
    """x: (B, num_inputs) f32; w1: (num_inputs, H); b1: (1, H) or (H,);
    w2: (H, num_actions); b2: (1, num_actions) or (num_actions,).
    Returns q-values (B, num_actions) f32 (same semantics as the PyTorch module)."""
    B, K = x.shape
    H = w1.shape[1]
    A = w2.shape[1]
    assert w1.shape == (K, H) and w2.shape == (H, A)
    assert block_b % 128 == 0

    # --- Pack the (tiny) transposed weights + biases into one VMEM-resident operand.
    #     rows [0:H)   = [ W1^T | b1 ]
    #     rows [H:H+A) = [ W2^T | b2 ]
    cmax = max(K, H) + 1
    params = jnp.zeros((H + A, cmax), jnp.float32)
    params = params.at[:H, :K].set(jnp.asarray(w1, jnp.float32).T)
    params = params.at[:H, K].set(jnp.asarray(b1, jnp.float32).reshape(-1))
    params = params.at[H:, :H].set(jnp.asarray(w2, jnp.float32).T)
    params = params.at[H:, H].set(jnp.asarray(b2, jnp.float32).reshape(-1))

    # --- Feature-major, low-precision input for the kernel (lane axis = batch).
    # TODO(synk): in a real replay-buffer pipeline, store the buffer feature-major
    # and in bf16 upstream so this transpose+cast is free rather than an extra
    # XLA pass over x.
    xt = x.T.astype(compute_dtype)                       # (K, B)

    # Batch tile: full batch if small (last dim == full dim), else a 128-multiple.
    tb = B if B <= block_b else block_b
    grid = (pl.cdiv(B, tb),)

    def kernel(params_ref, xt_ref, qt_ref):
        p = params_ref[...]                              # (H+A, cmax), resident
        w1t = p[:H, :K]                                  # (H, K)
        b1c = p[:H, K:K + 1]                             # (H, 1)
        w2t = p[H:, :H]                                  # (A, H)
        b2c = p[H:, H:H + 1]                             # (A, 1)
        xb = xt_ref[...].astype(jnp.float32)             # (K, TB) upcast after load
        h = jnp.dot(w1t, xb, preferred_element_type=jnp.float32) + b1c   # (H, TB)
        h = jnp.maximum(h, 0.0)                          # ReLU on the VPU
        q = jnp.dot(w2t, h, preferred_element_type=jnp.float32) + b2c    # (A, TB)
        qt_ref[...] = q.astype(qt_ref.dtype)             # lane-dense store

    qt = pl.pallas_call(
        kernel,
        out_shape=jax.ShapeDtypeStruct((A, B), jnp.float32),
        grid=grid,
        in_specs=[
            pl.BlockSpec((H + A, cmax), lambda i: (0, 0)),   # weights stay resident
            pl.BlockSpec((K, tb), lambda i: (0, i)),         # streamed batch tile
        ],
        out_specs=pl.BlockSpec((A, tb), lambda i: (0, i)),
        compiler_params=pltpu.CompilerParams(
            dimension_semantics=("parallel",),               # v7x: 2 TCs split the grid
            vmem_limit_bytes=32 * 1024 * 1024,
        ),
    )(params, xt)

    return qt.T                                          # (B, num_actions)


def init_params(key, num_inputs, num_actions, hidden=4):
    """Deterministic synthetic init (PyTorch-style uniform fan-in bounds).
    Weights stored as (in, out): the transpose of PyTorch's (out, in) layout."""
    k1, k2, k3, k4 = jax.random.split(key, 4)
    bound1 = 1.0 / jnp.sqrt(num_inputs)
    bound2 = 1.0 / jnp.sqrt(hidden)
    w1 = jax.random.uniform(k1, (num_inputs, hidden), jnp.float32, -bound1, bound1)
    b1 = jax.random.uniform(k2, (1, hidden), jnp.float32, -bound1, bound1)
    w2 = jax.random.uniform(k3, (hidden, num_actions), jnp.float32, -bound2, bound2)
    b2 = jax.random.uniform(k4, (1, num_actions), jnp.float32, -bound2, bound2)
    return w1, b1, w2, b2


if __name__ == "__main__":
    key = jax.random.PRNGKey(0)
    kx, kp, kx2 = jax.random.split(key, 3)

    num_inputs, num_actions = 4, 2
    w1, b1, w2, b2 = init_params(kp, num_inputs, num_actions)

    hi = jax.lax.Precision.HIGHEST

    def reference(x):
        # Same bf16 input quantization as the kernel boundary, rest in f32.
        xq = x.astype(jnp.bfloat16).astype(jnp.float32)
        h = jnp.maximum(jnp.dot(xq, w1, precision=hi) + b1, 0.0)
        return jnp.dot(h, w2, precision=hi) + b2

    # Small inference-style batch (single grid step, tile == full batch).
    x_small = jax.random.normal(kx, (2, num_inputs), jnp.float32)
    out_small = dqn_forward(x_small, w1, b1, w2, b2)
    jax.block_until_ready(out_small)
    assert out_small.shape == (2, num_actions)
    assert jnp.allclose(out_small, reference(x_small), atol=2e-3, rtol=2e-3)

    # Larger batch with a forced 128-row tile to exercise the pipelined batch grid
    # (3 grid steps; packed weights stay VMEM-resident across steps).
    x_big = jax.random.normal(kx2, (384, num_inputs), jnp.float32)
    out_big = dqn_forward(x_big, w1, b1, w2, b2, block_b=128)
    jax.block_until_ready(out_big)
    assert out_big.shape == (384, num_actions)
    assert jnp.allclose(out_big, reference(x_big), atol=2e-3, rtol=2e-3)

    print("KERNEL_OK")
</pallas_src>

<mosaic_0001>
module attributes {stable_mosaic.version = 11 : i64} {
  func.func @kernel(%arg0: i32, %arg1: memref<6x5xf32, #tpu.memory_space<vmem>>, %arg2: memref<4x2xbf16, #tpu.memory_space<vmem>>, %arg3: memref<2x2xf32, #tpu.memory_space<vmem>>) attributes {dimension_semantics = [#tpu.dimension_semantics<parallel>], iteration_bounds = array<i64: 1>, scalar_prefetch = 0 : i64, scratch_operands = 0 : i64, tpu.core_type = #tpu.core_type<tc>, window_params = [{pipeline_mode = #tpu.pipeline_mode<synchronous>, transform_indices = @transform_0, window_bounds = array<i64: 6, 5>}, {transform_indices = @transform_1, window_bounds = array<i64: 4, 2>}, {transform_indices = @transform_2, window_bounds = array<i64: 2, 2>}]} {
    %c0 = arith.constant 0 : index
    %c0_0 = arith.constant 0 : index
    %0 = vector.load %arg1[%c0, %c0_0] : memref<6x5xf32, #tpu.memory_space<vmem>>, vector<6x5xf32>
    %1 = vector.extract_strided_slice %0 {offsets = [0, 0], sizes = [4, 4], strides = [1, 1]} : vector<6x5xf32> to vector<4x4xf32>
    %2 = vector.extract_strided_slice %0 {offsets = [0, 4], sizes = [4, 1], strides = [1, 1]} : vector<6x5xf32> to vector<4x1xf32>
    %3 = vector.extract_strided_slice %0 {offsets = [4, 0], sizes = [2, 4], strides = [1, 1]} : vector<6x5xf32> to vector<2x4xf32>
    %4 = vector.extract_strided_slice %0 {offsets = [4, 4], sizes = [2, 1], strides = [1, 1]} : vector<6x5xf32> to vector<2x1xf32>
    %c0_1 = arith.constant 0 : index
    %c0_2 = arith.constant 0 : index
    %5 = vector.load %arg2[%c0_1, %c0_2] : memref<4x2xbf16, #tpu.memory_space<vmem>>, vector<4x2xbf16>
    %6 = arith.extf %5 : vector<4x2xbf16> to vector<4x2xf32>
    %cst = arith.constant dense<0.000000e+00> : vector<4x2xf32>
    %7 = tpu.matmul %1, %6, %cst {dimension_numbers = #tpu.dot_dimension_numbers<[1], [0], [0], [1], [0, 0, 1, 1], [], []>} : vector<4x4xf32>, vector<4x2xf32>, vector<4x2xf32> -> vector<4x2xf32>
    %8 = vector.broadcast %2 : vector<4x1xf32> to vector<4x2xf32>
    %9 = arith.addf %7, %8 : vector<4x2xf32>
    %cst_3 = arith.constant 0.000000e+00 : f32
    %10 = vector.broadcast %cst_3 : f32 to vector<4x2xf32>
    %11 = arith.maximumf %9, %10 : vector<4x2xf32>
    %cst_4 = arith.constant dense<0.000000e+00> : vector<2x2xf32>
    %12 = tpu.matmul %3, %11, %cst_4 {dimension_numbers = #tpu.dot_dimension_numbers<[1], [0], [0], [1], [0, 0, 1, 1], [], []>} : vector<2x4xf32>, vector<4x2xf32>, vector<2x2xf32> -> vector<2x2xf32>
    %13 = vector.broadcast %4 : vector<2x1xf32> to vector<2x2xf32>
    %14 = arith.addf %12, %13 : vector<2x2xf32>
    %c0_5 = arith.constant 0 : index
    %c0_6 = arith.constant 0 : index
    %15 = vector.load %arg3[%c0_5, %c0_6] : memref<2x2xf32, #tpu.memory_space<vmem>>, vector<2x2xf32>
    tpu.vector_store %arg3[%c0_5, %c0_6], %14 {strides = array<i32>} : memref<2x2xf32, #tpu.memory_space<vmem>>, vector<2x2xf32>,
    return
  }
  func.func @transform_0(%arg0: i32) -> (i32, i32) {
    %c0_i32 = arith.constant 0 : i32
    %c0_i32_0 = arith.constant 0 : i32
    %c0_i32_1 = arith.constant 0 : i32
    return %c0_i32, %c0_i32_0 : i32, i32
  }
  func.func @transform_1(%arg0: i32) -> (i32, i32) {
    %c0_i32 = arith.constant 0 : i32
    %c0_i32_0 = arith.constant 0 : i32
    return %c0_i32, %arg0 : i32, i32
  }
  func.func @transform_2(%arg0: i32) -> (i32, i32) {
    %c0_i32 = arith.constant 0 : i32
    %c0_i32_0 = arith.constant 0 : i32
    return %c0_i32, %arg0 : i32, i32
  }
}

</mosaic_0001>

<bundles_post_ra>
// kernel: tpu_custom_call.1
= control target key start
LH: loop header
LB: loop body
LE: loop exit
PB: predicated region body
PF: predicated region fallthrough
CT: control target
= control target key end

     0   :  { %7 = vsyncpa [#allocation3], 0  ;;  %s324_s0 = inlined_call_operand.hbm [shape: f32[6,5], index: 0, kind: input, shape index: {}]   ;;  %s325_s1 = inlined_call_operand.vmem [shape: bf16[4,2], index: 1, kind: input, shape index: {}]   ;;  %s326_s2 = inlined_call_operand.hbm [shape: f32[2,2], index: 2, kind: output, shape index: {}]  }
   0x1   :  { %8 = vsyncpa [#allocation4], 0  ;;  %s277_s9 = smov [#allocation2]   ;;  %s229_s13 = scalar_lea.hbm %s324_s0, 128 }
   0x2   :  { %s15_s10 = sshll.u32 %s277_s9, 4  ;;  %p230_p0 = scmp.ne.s32.totalorder %s324_s0, %s229_s13  ;;  %s16_s10 = int_to_ptr.vmem [resolvable:$true] %s15_s10 }
   0x3   :  { %p233_p1 = scmp.lt.u32.totalorder %s229_s13, %s324_s0 }
   0x5   :  { %p235_p2 = pnand %p233_p1, %p230_p0 }
   0x7   :  { %238 = shalt.err (!%p235_p2)
}
   0x8   :  { %s239_s18 = scalar_lea.vmem %s16_s10, 128  ;;  %p244_p4 = scmp.lt.s32.totalorder %s16_s10, %s16_s10 }
   0x9   :  { %p240_p3 = scmp.ne.s32.totalorder %s16_s10, %s239_s18  ;;  %p245_p5 = scmp.lt.s32.totalorder %s239_s18, %s239_s18 }
   0xb   :  { %p246_p6 = por %p245_p5, %p244_p4 }
   0xd   :  { %p247_p7 = pnand %p246_p6, %p240_p3 }
   0xf   :  { %250 = shalt.err (!%p247_p7)
}
  0x10   :  { %18 = dma.hbm_to_vmem [thread:$0]  %s324_s0, 128, %s16_s10, [#allocation3]  }
  0x11   :  { %273 = dma.done.wait [#allocation3], 128  }
  0x12   :  { %274 = vsyncadd [#allocation3], 4294967168  ;;  %v278_v0 = vmov 0.0   ;;  %vm279_vm0 = vmmov 0   ;;  %v280_v1 = vmov 4   ;;  %vm35_vm1 = vcmask 1043456  }
  0x13   :  { %213 = vmatprep.subr.mxu0 %v278_v0  ;;  %215 = vmatprep.mubr.msk.f32.mxu0 %vm279_vm0, %v278_v0  ;;  %v25_v2 = vld [vmem:[%s325_s1] sm:$0x3]  ;;  %vm32_vm2 = vcmask 31744   ;;  %s281_s0 = smov [#allocation5]   ;;  %vm188_vm3 = vcmask 9216  }
  0x14   :  { %228 = vset.pattern.permute.xlu0 %v280_v1  ;;  %218 = vmatprep.subr.mxu1 %v278_v0  ;;  %v24_v3 = vld [vmem:[#allocation2] sm:$0x3f]  ;;  %v26_v4 = vunpack.c.l.bf16 %v25_v2  ;;  %s196_s23 = sshll.u32 %s281_s0, 4  ;;  %s197_s23 = int_to_ptr.vmem [resolvable:$true] %s196_s23 }
  0x15   :  { %220 = vmatprep.mubr.msk.f32.mxu1 %vm279_vm0, %v278_v0  ;;  %29 = vperm.xlu0 %228, %v24_v3   ;;  %v110_v9 = vrot.slane %v24_v3, 4  ;;  %s251_s1 = scalar_lea.vmem %s197_s23, 32  ;;  %p256_p9 = scmp.lt.s32.totalorder %s197_s23, %s197_s23 }
  0x16   :  { %214 = vmatpush3.msk.msra.mxu0 %vm35_vm1, %v26_v4  ;;  %p252_p8 = scmp.ne.s32.totalorder %s197_s23, %s251_s1  ;;  %p257_p10 = scmp.lt.s32.totalorder %s251_s1, %s251_s1 }
  0x17   :  { %216 = vmatmul.mubr.msk.f32.vlgmr.msra.gmra.mrb[0].mxu0 %vm32_vm2, %v24_v3 }
  0x18   :  { %p258_p11 = por %p257_p10, %p256_p9 }
  0x1a   :  { %p259_p12 = pnand %p258_p11, %p252_p8 }
  0x94   :  { %v30_v5 = vpop.permute.xlu0 %29 }
  0x95   :  { %v111_v11 = vrot.slane %v30_v5, 4 }
  0xea   :  { %v105_v6 = vpop.f32.mrb[0].mxu0 }
  0xeb   :  { %v106_v7 = vadd.f32 %v105_v6, %v30_v5  ;;  %v217_v8 = vpop.f32.mrb[1].mxu0 }
  0xed   :  { %v109_v10 = vmax.f32 %v106_v7, 0.0 }
  0xef   :  { %219 = vmatpush3.msk.msra.mxu1 %vm35_vm1, %v109_v10 }
  0xf0   :  { %221 = vmatmul.mubr.msk.f32.vlgmr.msra.gmra.mrb[0].mxu1 %vm32_vm2, %v110_v9 }
 0x1c3   :  { %v184_v12 = vpop.f32.mrb[0].mxu1 }
 0x1c4   :  { %v185_v13 = vadd.f32 %v184_v12, %v111_v11  ;;  %v222_v14 = vpop.f32.mrb[1].mxu1 }
 0x1c6   :  { %189 = vst.msk [vmem:[#allocation5] sm:$0x3] %vm188_vm3, %v185_v13 }
 0x1c7   :  { %262 = shalt.err (!%p259_p12)
}
 0x1c8   :  { %s263_s26 = scalar_lea.hbm %s326_s2, 32 }
 0x1c9   :  { %p264_p13 = scmp.ne.s32.totalorder %s326_s2, %s263_s26  ;;  %p267_p0 = scmp.lt.u32.totalorder %s263_s26, %s326_s2 }
 0x1cb   :  { %p269_p1 = pnand %p267_p0, %p264_p13 }
 0x1cd   :  { %272 = shalt.err (!%p269_p1)
}
 0x1ce   :  { %199 = dma.vmem_to_hbm [thread:$0]  %s197_s23, 32, %s326_s2, [#allocation4]  }
 0x1cf   :  { %275 = dma.done.wait [#allocation4], 32  }
 0x1d0   :  { %276 = vsyncadd [#allocation4], 4294967264 }
 0x1d1   :  { %203 = vsyncpa [#allocation3], 1 }
 0x1d2   :  { %204 = vsyncpa [#allocation4], 1 }

</bundles_post_ra>
